<compile_context>
chip_gen: v5e
topology: v5e:2x2
jax: 0.10.0
libtpu: 0.0.40
codegen_flags: <defaults>
</compile_context>

<pallas_src>
import functools

import jax
import jax.numpy as jnp
from jax.experimental import pallas as pl
from jax.experimental.pallas import tpu as pltpu


# ---------------------------------------------------------------------------
# Kernels
# ---------------------------------------------------------------------------
def _normalize_kernel(x_ref, o_ref, *, power):
    """Single-pass kernel: each tile holds complete rows (block_rows, D)."""
    x = x_ref[...]
    xf = x.astype(jnp.float32)                       # live only through the sum
    if power == 2:
        s = jnp.sum(xf * xf, axis=-1, keepdims=True)
        inv = jax.lax.rsqrt(s)                        # EUP slot, effectively free
    else:
        s = jnp.sum(xf ** power, axis=-1, keepdims=True)
        inv = s ** (-1.0 / power)                     # per-row only (cheap)
    # Scale in the input's native dtype (exact for f32; avoids holding a
    # second full f32 copy of the tile for bf16 inputs).
    o_ref[...] = (x * inv.astype(x.dtype)).astype(o_ref.dtype)


def _normalize_kernel_dsplit(x_ref, o_ref, acc_ref, *, power):
    """Two-pass kernel for very wide rows: grid = (row_blocks, 2, d_blocks).
    phase 0 accumulates the per-row L^p sum over D chunks; phase 1 revisits
    the same chunks and writes x * norm^-1."""
    phase = pl.program_id(1)
    k = pl.program_id(2)

    @pl.when((phase == 0) & (k == 0))
    def _():
        acc_ref[...] = jnp.zeros_like(acc_ref)

    x = x_ref[...]

    @pl.when(phase == 0)
    def _():
        xf = x.astype(jnp.float32)
        if power == 2:
            part = jnp.sum(xf * xf, axis=-1, keepdims=True)
        else:
            part = jnp.sum(xf ** power, axis=-1, keepdims=True)
        acc_ref[...] = acc_ref[...] + part

    @pl.when(phase == 1)
    def _():
        s = acc_ref[...]
        if power == 2:
            inv = jax.lax.rsqrt(s)
        else:
            inv = s ** (-1.0 / power)
        o_ref[...] = (x * inv.astype(x.dtype)).astype(o_ref.dtype)


# ---------------------------------------------------------------------------
# Tiling heuristics
# ---------------------------------------------------------------------------
def _sublane_multiple(dtype) -> int:
    itemsize = jnp.dtype(dtype).itemsize
    return {4: 8, 2: 16, 1: 32}.get(itemsize, 8)


def _round_up(x, m):
    return -(-x // m) * m


def _chip_params():
    """Generation-aware knobs: (target_tile_bytes, vmem_limit_bytes, num_tc)."""
    kind = ""
    try:
        kind = jax.devices()[0].device_kind.lower()
    except Exception:
        pass
    if "v7" in kind:          # 64 MiB VMEM, 3.2 TB/s HBM, 2 TensorCores/chip
        return 4 << 20, 48 << 20, 2
    if "v5" in kind:          # v5e: scoped default is only 16 MiB -> override
        return 2 << 20, 32 << 20, 1
    return 4 << 20, 40 << 20, 1   # v6e / default (128 MiB physical VMEM)


def _single_pass_bytes(rows, D, itemsize):
    tile = rows * D * itemsize
    # 2x(in) + 2x(out) double-buffers + f32 reduction temporaries of one tile.
    return 4 * tile + 2 * rows * D * 4


def _choose_block_rows(B, D, dtype, *, target_tile_bytes, vmem_limit_bytes, num_tc):
    sub = _sublane_multiple(dtype)
    itemsize = jnp.dtype(dtype).itemsize
    row_bytes = max(1, D * itemsize)
    rows = max(sub, target_tile_bytes // row_bytes)
    rows = max(sub, (rows // sub) * sub)              # sublane-multiple tile
    if num_tc > 1:
        # Keep >= num_tc grid steps so the "parallel" axis can shard across
        # TensorCores (only shrinks the tile when the grid would be tiny).
        per_core = _round_up(max(1, -(-B // num_tc)), sub)
        rows = min(rows, max(sub, per_core))
    rows = min(rows, _round_up(B, sub))               # no point exceeding padded B
    # Safeguard: shrink until buffers + f32 temps fit under the VMEM limit.
    while rows > sub and _single_pass_bytes(rows, D, itemsize) > vmem_limit_bytes:
        rows = max(sub, (rows // 2 // sub) * sub)
    return rows


def _choose_d_block(D_pad, block_rows, dtype, *, vmem_limit_bytes):
    itemsize = jnp.dtype(dtype).itemsize
    budget = max(128 * block_rows * itemsize, vmem_limit_bytes // 8)
    d_block = max(128, (budget // (block_rows * itemsize)) // 128 * 128)
    d_block = min(d_block, D_pad)
    # The reduced dim must tile exactly (garbage in a partial D-chunk would
    # pollute every row's sum). 128 always divides D_pad, so this terminates.
    while D_pad % d_block != 0:
        d_block -= 128
    return d_block


# ---------------------------------------------------------------------------
# Public wrapper
# ---------------------------------------------------------------------------
def normalize(x, power=2, *, block_rows=None, d_block=None):
    """Row-wise L^p normalization of a 2-D array, equivalent to Normalize(power)(x)."""
    B, D = x.shape
    if float(power).is_integer():
        power = int(power)        # keep integral powers on lax.integer_pow (VPU)

    target_tile, vmem_limit, num_tc = _chip_params()
    itemsize = jnp.dtype(x.dtype).itemsize

    # Lane-dense loads/stores: pad the reduced dim to a multiple of 128.
    # Zeros contribute 0 to the L^p sum, so results are unchanged.
    D_pad = _round_up(D, 128)
    x_in = x if D_pad == D else jnp.pad(x, ((0, 0), (0, D_pad - D)))

    if block_rows is None:
        block_rows = _choose_block_rows(
            B, D_pad, x.dtype, target_tile_bytes=target_tile,
            vmem_limit_bytes=vmem_limit, num_tc=num_tc)

    single_pass_ok = _single_pass_bytes(block_rows, D_pad, itemsize) <= vmem_limit
    use_dsplit = (d_block is not None and d_block < D_pad) or not single_pass_ok

    if power == 2:
        transcendentals = B                    # rsqrt per row
    elif isinstance(power, int):
        transcendentals = 2 * B                # only the per-row norm^(-1/p)
    else:
        transcendentals = 2 * B * D + 2 * B    # float pow = exp/log per element

    if not use_dsplit:
        grid = (pl.cdiv(B, block_rows),)
        out = pl.pallas_call(
            functools.partial(_normalize_kernel, power=power),
            out_shape=jax.ShapeDtypeStruct((B, D_pad), x.dtype),
            grid_spec=pltpu.PrefetchScalarGridSpec(
                num_scalar_prefetch=0,
                grid=grid,
                in_specs=[pl.BlockSpec((block_rows, D_pad), lambda i: (i, 0))],
                out_specs=pl.BlockSpec((block_rows, D_pad), lambda i: (i, 0)),
            ),
            compiler_params=pltpu.CompilerParams(
                dimension_semantics=("parallel",),
                vmem_limit_bytes=vmem_limit,
            ),
            cost_estimate=pl.CostEstimate(
                flops=3 * B * D,
                transcendentals=transcendentals,
                bytes_accessed=2 * B * D * itemsize,
            ),
        )(x_in)
    else:
        # Wide-row path: reduce over D chunks (phase 0), then scale (phase 1).
        if d_block is None:
            d_block = _choose_d_block(D_pad, block_rows, x.dtype,
                                      vmem_limit_bytes=vmem_limit)
        assert d_block % 128 == 0 and D_pad % d_block == 0, (
            "d_block must be a multiple of 128 that divides the padded feature dim")
        grid = (pl.cdiv(B, block_rows), 2, D_pad // d_block)
        out = pl.pallas_call(
            functools.partial(_normalize_kernel_dsplit, power=power),
            out_shape=jax.ShapeDtypeStruct((B, D_pad), x.dtype),
            grid_spec=pltpu.PrefetchScalarGridSpec(
                num_scalar_prefetch=0,
                grid=grid,
                in_specs=[pl.BlockSpec((block_rows, d_block),
                                       lambda i, p, k: (i, k))],
                out_specs=pl.BlockSpec((block_rows, d_block),
                                       lambda i, p, k: (i, k)),
                scratch_shapes=[pltpu.VMEM((block_rows, 1), jnp.float32)],
            ),
            compiler_params=pltpu.CompilerParams(
                dimension_semantics=("parallel", "arbitrary", "arbitrary"),
                vmem_limit_bytes=vmem_limit,
            ),
            cost_estimate=pl.CostEstimate(
                flops=3 * B * D,
                transcendentals=transcendentals,
                bytes_accessed=4 * B * D * itemsize,   # inputs read twice
            ),
        )(x_in)

    if D_pad != D:
        out = out[:, :D]
    return out


def _reference(x, power=2):
    norm = jnp.sum(x ** power, axis=1, keepdims=True) ** (1.0 / power)
    return x / norm


if __name__ == "__main__":
    # Main case: L2-normalized feature rows, the module's typical use.
    B, D = 16, 128
    x = jax.random.normal(jax.random.PRNGKey(0), (B, D), dtype=jnp.float32)
    out = jax.block_until_ready(normalize(x, power=2))
    ref = _reference(x, power=2)
    assert out.shape == x.shape and out.dtype == x.dtype
    assert jnp.allclose(out, ref, atol=1e-5, rtol=1e-5)

    # Non-128-aligned feature dim (exercises the lane-dense padding path).
    x2 = jax.random.normal(jax.random.PRNGKey(1), (8, 100), dtype=jnp.float32)
    out2 = jax.block_until_ready(normalize(x2, power=2))
    assert jnp.allclose(out2, _reference(x2, power=2), atol=1e-5, rtol=1e-5)

    # General integer power (positive inputs keep the odd-power norm well defined).
    x3 = jnp.abs(jax.random.normal(jax.random.PRNGKey(2), (8, 128),
                                   dtype=jnp.float32)) + 0.1
    out3 = jax.block_until_ready(normalize(x3, power=3))
    assert jnp.allclose(out3, _reference(x3, power=3), atol=1e-5, rtol=1e-5)

    # Force the wide-row D-split (reduce + scale) path on a small shape.
    x4 = jax.random.normal(jax.random.PRNGKey(3), (16, 256), dtype=jnp.float32)
    out4 = jax.block_until_ready(normalize(x4, power=2, block_rows=8, d_block=128))
    assert jnp.allclose(out4, _reference(x4, power=2), atol=1e-5, rtol=1e-5)

    print("KERNEL_OK")
</pallas_src>

<mosaic_0001>
module attributes {stable_mosaic.version = 11 : i64} {
  func.func @_normalize_kernel(%arg0: i32, %arg1: memref<16x128xf32, #tpu.memory_space<vmem>>, %arg2: memref<16x128xf32, #tpu.memory_space<vmem>>) attributes {dimension_semantics = [#tpu.dimension_semantics<parallel>], iteration_bounds = array<i64: 1>, scalar_prefetch = 0 : i64, scratch_operands = 0 : i64, tpu.core_type = #tpu.core_type<tc>, window_params = [{transform_indices = @transform_0, window_bounds = array<i64: 16, 128>}, {transform_indices = @transform_1, window_bounds = array<i64: 16, 128>}]} {
    %c0 = arith.constant 0 : index
    %c0_0 = arith.constant 0 : index
    %0 = vector.load %arg1[%c0, %c0_0] : memref<16x128xf32, #tpu.memory_space<vmem>>, vector<16x128xf32>
    %1 = arith.mulf %0, %0 : vector<16x128xf32>
    %cst = arith.constant dense<0.000000e+00> : vector<16xf32>
    %2 = vector.multi_reduction <add>, %1, %cst [1] : vector<16x128xf32> to vector<16xf32>
    %3 = vector.shape_cast %2 : vector<16xf32> to vector<16x1xf32>
    %4 = math.rsqrt %3 : vector<16x1xf32>
    %5 = vector.broadcast %4 : vector<16x1xf32> to vector<16x128xf32>
    %6 = arith.mulf %0, %5 : vector<16x128xf32>
    %c0_1 = arith.constant 0 : index
    %c0_2 = arith.constant 0 : index
    %7 = vector.load %arg2[%c0_1, %c0_2] : memref<16x128xf32, #tpu.memory_space<vmem>>, vector<16x128xf32>
    tpu.vector_store %arg2[%c0_1, %c0_2], %6 {strides = array<i32>} : memref<16x128xf32, #tpu.memory_space<vmem>>, vector<16x128xf32>,
    return
  }
  func.func @transform_0(%arg0: i32) -> (i32, i32) {
    %c0_i32 = arith.constant 0 : i32
    %c0_i32_0 = arith.constant 0 : i32
    return %arg0, %c0_i32 : i32, i32
  }
  func.func @transform_1(%arg0: i32) -> (i32, i32) {
    %c0_i32 = arith.constant 0 : i32
    %c0_i32_0 = arith.constant 0 : i32
    return %arg0, %c0_i32 : i32, i32
  }
}

</mosaic_0001>

<bundles_post_ra>
// kernel: tpu_custom_call.1
= control target key start
LH: loop header
LB: loop body
LE: loop exit
PB: predicated region body
PF: predicated region fallthrough
CT: control target
= control target key end

     0   :  { %6 = vsyncpa [#allocation3], 0  ;;  %s162_s0 = inlined_call_operand.hbm [shape: f32[16,128], index: 0, kind: input, shape index: {}]   ;;  %s163_s1 = inlined_call_operand.hbm [shape: f32[16,128], index: 1, kind: output, shape index: {}]  }
   0x1   :  { %7 = vsyncpa [#allocation4], 0  ;;  %s12_s8 = sshll.u32 %s162_s0, 4  ;;  %s136_s9 = smov [#allocation2]   ;;  %s13_s8 = int_to_ptr.hbm [resolvable:$true] %s12_s8 }
   0x2   :  { %s14_s10 = sshll.u32 %s136_s9, 4  ;;  %s137_s11 = smov 128   ;;  %s15_s10 = int_to_ptr.vmem [resolvable:$true] %s14_s10 }
   0x3   :  { %s138_s12 = smov 8  }
   0x4   :  { %20 = dma.hbm_to_vmem [thread:$0]  %s13_s8, 256, %s15_s10, [#allocation3], %s137_s11, %s137_s11, %s138_s12  }
   0x5   :  { %132 = dma.done.wait [#allocation3], 256  }
   0x6   :  { %133 = vsyncadd [#allocation3], 4294967040  ;;  %v25_v0 = vld [vmem:[#allocation2] sm:$0xff]  ;;  %v26_v2 = vld [vmem:[#allocation2 + $0x8] sm:$0xff]  ;;  %s139_s0 = smov [#allocation5]   ;;  %s63_s16 = sshll.u32 %s163_s1, 4  ;;  %s64_s16 = int_to_ptr.hbm [resolvable:$true] %s63_s16 }
   0x7   :  { %v27_v1 = vmul.f32 %v25_v0, %v25_v0  ;;  %v28_v3 = vmul.f32 %v26_v2, %v26_v2  ;;  %s61_s13 = sshll.u32 %s139_s0, 4  ;;  %s62_s13 = int_to_ptr.vmem [resolvable:$true] %s61_s13 }
   0x9   :  { %29 = vadd.xlane.f32.xlu0 %v27_v1 }
  0x11   :  { %31 = vadd.xlane.f32.xlu0 %v28_v3 }
  0x7c   :  { %v30_v4 = vpop.xlane.xlu0 %29 }
  0x7d   :  { %80 = vrsqrt.f32 %v30_v4  ;;  %vm39_vm1 = vweird.f32 %v30_v4 }
  0x83   :  { %v81_v5 = vpop.eup %80 }
  0x84   :  { %v34_v6 = vmul.f32 %v81_v5, %v30_v4  ;;  %v32_v7 = vpop.xlane.xlu0 %31  ;;  %vm40_vm0 = vweird.f32 %v81_v5 }
  0x85   :  { %82 = vrsqrt.f32 %v32_v7  ;;  %vm41_vm2 = vmor %vm39_vm1, %vm40_vm0  ;;  %vm49_vm4 = vweird.f32 %v32_v7 }
  0x86   :  { %v35_v8 = vmul.f32 %v81_v5, %v34_v6 }
  0x88   :  { %v36_v9 = vmul.f32 0.5, %v35_v8 }
  0x8a   :  { %v37_v10 = vsub.f32 1.5, %v36_v9 }
  0x8b   :  { %v83_v11 = vpop.eup %82 }
  0x8c   :  { %v38_v12 = vmul.f32 %v81_v5, %v37_v10  ;;  %v44_v13 = vmul.f32 %v83_v11, %v32_v7  ;;  %vm50_vm3 = vweird.f32 %v83_v11 }
  0x8d   :  { %vm51_vm5 = vmor %vm49_vm4, %vm50_vm3 }
  0x8e   :  { %v42_v14 = vsel %vm41_vm2, %v81_v5, %v38_v12  ;;  %v45_v15 = vmul.f32 %v83_v11, %v44_v13 }
  0x8f   :  { %v53_v16 = vmul.f32 %v42_v14, %v25_v0 }
  0x90   :  { %v46_v17 = vmul.f32 0.5, %v45_v15 }
  0x91   :  { %55 = vst [vmem:[#allocation5] sm:$0xff] %v53_v16 }
  0x92   :  { %v47_v18 = vsub.f32 1.5, %v46_v17 }
  0x94   :  { %v48_v19 = vmul.f32 %v83_v11, %v47_v18 }
  0x96   :  { %v52_v20 = vsel %vm51_vm5, %v83_v11, %v48_v19 }
  0x97   :  { %v54_v21 = vmul.f32 %v52_v20, %v26_v2 }
  0x99   :  { %56 = vst [vmem:[#allocation5 + $0x8] sm:$0xff] %v54_v21 }
  0x9a   :  { %69 = dma.vmem_to_hbm [thread:$0]  %s62_s13, 256, %s64_s16, [#allocation4], %s137_s11, %s137_s11, %s138_s12  }
  0x9b   :  { %134 = dma.done.wait [#allocation4], 256  }
  0x9c   :  { %135 = vsyncadd [#allocation4], 4294967040 }
  0x9d   :  { %74 = vsyncpa [#allocation3], 1 }
  0x9e   :  { %75 = vsyncpa [#allocation4], 1 }

</bundles_post_ra>
